<compile_context>
chip_gen: v7x
topology: tpu7x:2x2x1
jax: 0.10.0
libtpu: 0.0.40
codegen_flags: <defaults>
</compile_context>

<pallas_src>
import jax
import jax.numpy as jnp
from jax import lax
from jax.experimental import pallas as pl
from jax.experimental.pallas import tpu as pltpu


def _round_up(x: int, m: int) -> int:
    return ((x + m - 1) // m) * m


def _vmem_budget_bytes() -> int:
    """~75% of this generation's per-core VMEM (safe default if the query fails)."""
    try:
        cap = int(pltpu.get_tpu_info().vmem_capacity_bytes)
    except Exception:
        cap = 64 * 1024 * 1024  # v7x per-core VMEM: safe lower bound across generations
    return (3 * cap) // 4


# --------------------------------------------------------------------------------------
# Path A: word table resident in VMEM, per-row dynamic gather (no MXU, no one-hot).
# --------------------------------------------------------------------------------------
def _embed_resident_kernel(ids_ref, w_ref, p_ref, o_ref):
    """ids_ref: (seq_padded,) int32 SMEM (scalar prefetch)
    w_ref  : (V, D)  word table, VMEM resident (constant block)
    p_ref  : (TB, D) positional rows for this token block
    o_ref  : (TB, D) output rows for this token block
    """
    tb = o_ref.shape[0]
    base = pl.program_id(0) * tb

    def body(r, carry):
        tok = ids_ref[base + r]                                   # scalar id from SMEM
        row = w_ref[pl.ds(tok, 1), :].astype(jnp.float32)         # (1, D) dynamic gather
        pos = p_ref[pl.ds(r, 1), :].astype(jnp.float32)           # (1, D)
        o_ref[pl.ds(r, 1), :] = (row + pos).astype(o_ref.dtype)
        return carry

    lax.fori_loop(0, tb, body, 0, unroll=(tb <= 64))


# --------------------------------------------------------------------------------------
# Path B: large-vocab fallback — table stays in HBM, per-token row DMAs (double-buffered).
# --------------------------------------------------------------------------------------
def _embed_hbm_gather_kernel(ids_ref, w_hbm, p_ref, o_ref, buf_ref, sem):
    """ids_ref: (seq_padded,) int32 SMEM
    w_hbm  : (V, D) word table left in HBM (memory_space=pl.ANY)
    p_ref  : (TB, D) positional rows (VMEM)
    o_ref  : (TB, D) output rows (VMEM)
    buf_ref: (TB, D) VMEM gather buffer
    sem    : (2,)    DMA semaphores -> two row-DMAs kept in flight
    """
    tb = o_ref.shape[0]
    base = pl.program_id(0) * tb

    def start_row(r):
        tok = ids_ref[base + r]
        pltpu.make_async_copy(
            w_hbm.at[pl.ds(tok, 1), :],
            buf_ref.at[pl.ds(r, 1), :],
            sem.at[r % 2],
        ).start()

    def wait_row(r):
        pltpu.make_async_copy(
            w_hbm.at[pl.ds(0, 1), :],          # same-shape descriptor; dst/sem are what matter
            buf_ref.at[pl.ds(r, 1), :],
            sem.at[r % 2],
        ).wait()

    start_row(0)
    if tb > 1:
        start_row(1)

    def body(r, carry):
        wait_row(r)

        @pl.when(r + 2 < tb)
        def _():
            start_row(r + 2)

        return carry

    lax.fori_loop(0, tb, body, 0)

    # One big vectorized add + full-tile (lane-dense, unmasked) store.
    o_ref[...] = (buf_ref[...].astype(jnp.float32)
                  + p_ref[...].astype(jnp.float32)).astype(o_ref.dtype)


# --------------------------------------------------------------------------------------
# Wrapper
# --------------------------------------------------------------------------------------
def embedding_layer(token_ids, word_table, pos_table, *,
                    max_block_tokens=512, force_hbm_gather=False):
    """out[i] = word_table[token_ids[i]] + pos_table[i], for i in range(seq)."""
    seq = token_ids.shape[0]
    vocab, dim = word_table.shape
    assert pos_table.shape[0] >= seq, "context_length must cover the sequence"
    assert pos_table.shape[1] == dim

    itemsize = jnp.dtype(word_table.dtype).itemsize
    table_bytes = vocab * dim * itemsize

    # Token block: multiple of 8 sublanes; large blocks amortize per-step overhead and
    # keep pos/out tiles as big unmasked transfers.
    tb = min(_round_up(max_block_tokens, 8), _round_up(seq, 8))
    seq_padded = _round_up(seq, tb)
    num_blocks = seq_padded // tb
    tile_bytes = tb * dim * itemsize

    # Boundary prep (cheap, not the hot path): clamp ids (nn.Embedding would raise on
    # out-of-range ids), pad ids/pos to the block boundary.
    ids = jnp.clip(token_ids.astype(jnp.int32), 0, vocab - 1)
    ids = jnp.pad(ids, (0, seq_padded - seq))
    pos = pos_table[:seq].astype(word_table.dtype)
    if seq_padded > seq:
        pos = jnp.pad(pos, ((0, seq_padded - seq), (0, 0)))

    vmem_budget = _vmem_budget_bytes()
    out_shape = jax.ShapeDtypeStruct((seq_padded, dim), word_table.dtype)

    # Conservative resident-path requirement: assume the table might end up
    # double-buffered (if single-buffering is unavailable) + double-buffered pos/out
    # tiles + slack.
    resident_need = 2 * table_bytes + 4 * tile_bytes + (2 << 20)
    use_resident = (not force_hbm_gather) and (resident_need <= vmem_budget)

    if use_resident:
        # On v7x megacore each TC DMAs its own copy of the resident table; only shard the
        # grid across cores when per-core useful traffic outweighs that duplicated fetch.
        shard = (num_blocks > 1) and (seq_padded * dim * itemsize >= 2 * table_bytes)
        dims = ("parallel",) if shard else ("arbitrary",)
        cost = pl.CostEstimate(
            flops=seq_padded * dim,  # one add per output element (bandwidth-bound op)
            transcendentals=0,
            bytes_accessed=table_bytes + 2 * seq_padded * dim * itemsize + seq_padded * 4,
        )
        vmem_limit = min(vmem_budget, max(resident_need, 32 * 1024 * 1024))

        def call(single_buffer_table):
            table_kwargs = {}
            if single_buffer_table:
                # Constant index_map => block never changes; double-buffering it would
                # just reserve 2x table VMEM for nothing.
                table_kwargs["pipeline_mode"] = pl.Buffered(1)
            grid_spec = pltpu.PrefetchScalarGridSpec(
                num_scalar_prefetch=1,                    # ids -> SMEM scalars
                grid=(num_blocks,),
                in_specs=[
                    pl.BlockSpec((vocab, dim), lambda i, ids_s: (0, 0), **table_kwargs),
                    pl.BlockSpec((tb, dim), lambda i, ids_s: (i, 0)),
                ],
                out_specs=pl.BlockSpec((tb, dim), lambda i, ids_s: (i, 0)),
            )
            return pl.pallas_call(
                _embed_resident_kernel,
                out_shape=out_shape,
                grid_spec=grid_spec,
                compiler_params=pltpu.CompilerParams(
                    dimension_semantics=dims, vmem_limit_bytes=vmem_limit),
                cost_estimate=cost,
            )(ids, word_table, pos)

        try:
            out_padded = call(single_buffer_table=True)
        except Exception:
            # Pallas build without single-buffer support: retry with the default
            # (double-buffered) table spec — functionally identical.
            out_padded = call(single_buffer_table=False)
    else:
        # Large-vocab fallback: table stays in HBM, rows are DMA-gathered per token.
        cost = pl.CostEstimate(
            flops=seq_padded * dim,
            transcendentals=0,
            bytes_accessed=3 * seq_padded * dim * itemsize + seq_padded * 4,
        )
        vmem_limit = min(vmem_budget, max(5 * tile_bytes + (2 << 20), 16 * 1024 * 1024))
        grid_spec = pltpu.PrefetchScalarGridSpec(
            num_scalar_prefetch=1,
            grid=(num_blocks,),
            in_specs=[
                pl.BlockSpec(memory_space=pl.ANY),                  # word table in HBM
                pl.BlockSpec((tb, dim), lambda i, ids_s: (i, 0)),   # pos rows
            ],
            out_specs=pl.BlockSpec((tb, dim), lambda i, ids_s: (i, 0)),
            scratch_shapes=[
                pltpu.VMEM((tb, dim), word_table.dtype),            # gather buffer
                pltpu.SemaphoreType.DMA((2,)),                      # 2 row-DMAs in flight
            ],
        )
        out_padded = pl.pallas_call(
            _embed_hbm_gather_kernel,
            out_shape=out_shape,
            grid_spec=grid_spec,
            compiler_params=pltpu.CompilerParams(
                dimension_semantics=("parallel",), vmem_limit_bytes=vmem_limit),
            cost_estimate=cost,
        )(ids, word_table, pos)

    return out_padded[:seq]


if __name__ == "__main__":
    # Module hyper-params (small, TPU-friendly: dim is a multiple of 128).
    vocab_size = 64
    dim_embedding = 128
    context_length = 16
    seq = 8

    key = jax.random.PRNGKey(0)
    k_w, k_p, k_x = jax.random.split(key, 3)

    # nn.Embedding default init ~ N(0, 1)
    word_table = jax.random.normal(k_w, (vocab_size, dim_embedding), dtype=jnp.float32)
    pos_table = jax.random.normal(k_p, (context_length, dim_embedding), dtype=jnp.float32)

    # Input token ids, shape (seq,)
    x = jax.random.randint(k_x, (seq,), 0, vocab_size, dtype=jnp.int32)

    # Pure-JAX reference.
    ref = word_table[x] + pos_table[:seq]

    # Path A: VMEM-resident table (the normal path for this vocab size).
    out = embedding_layer(x, word_table, pos_table)
    out = jax.block_until_ready(out)
    assert out.shape == (seq, dim_embedding)
    assert out.dtype == jnp.float32
    assert jnp.allclose(out, ref, atol=1e-6, rtol=1e-6)

    # Path B: force the large-vocab HBM row-gather fallback on the same data.
    out_hbm = embedding_layer(x, word_table, pos_table, force_hbm_gather=True)
    out_hbm = jax.block_until_ready(out_hbm)
    assert jnp.allclose(out_hbm, ref, atol=1e-6, rtol=1e-6)

    print("KERNEL_OK")
</pallas_src>

<mosaic_0001>
module attributes {stable_mosaic.version = 11 : i64} {
  func.func @_embed_resident_kernel(%arg0: i32, %arg1: memref<8xi32, #tpu.memory_space<smem>>, %arg2: memref<64x128xf32, #tpu.memory_space<vmem>>, %arg3: memref<8x128xf32, #tpu.memory_space<vmem>>, %arg4: memref<8x128xf32, #tpu.memory_space<vmem>>) attributes {dimension_semantics = [#tpu.dimension_semantics<arbitrary>], iteration_bounds = array<i64: 1>, scalar_prefetch = 1 : i64, scratch_operands = 0 : i64, tpu.core_type = #tpu.core_type<tc>, window_params = [{pipeline_mode = #tpu.pipeline_mode<synchronous>, transform_indices = @transform_0, window_bounds = array<i64: 64, 128>}, {transform_indices = @transform_1, window_bounds = array<i64: 8, 128>}, {transform_indices = @transform_2, window_bounds = array<i64: 8, 128>}]} {
    %c8_i32 = arith.constant 8 : i32
    %0 = arith.muli %arg0, %c8_i32 : i32
    %c0_i32 = arith.constant 0 : i32
    %1 = arith.addi %0, %c0_i32 : i32
    %2 = arith.index_cast %1 : i32 to index
    %3 = memref.load %arg1[%2] : memref<8xi32, #tpu.memory_space<smem>>
    %4 = arith.index_cast %3 : i32 to index
    %c0 = arith.constant 0 : index
    %5 = vector.load %arg2[%4, %c0] : memref<64x128xf32, #tpu.memory_space<vmem>>, vector<1x128xf32>
    %6 = arith.index_cast %c0_i32 : i32 to index
    %c0_0 = arith.constant 0 : index
    %7 = vector.load %arg3[%6, %c0_0] : memref<8x128xf32, #tpu.memory_space<vmem>>, vector<1x128xf32>
    %8 = arith.addf %5, %7 : vector<1x128xf32>
    %9 = arith.index_cast %c0_i32 : i32 to index
    %c0_1 = arith.constant 0 : index
    %10 = vector.load %arg4[%9, %c0_1] : memref<8x128xf32, #tpu.memory_space<vmem>>, vector<1x128xf32>
    tpu.vector_store %arg4[%9, %c0_1], %8 {strides = array<i32>} : memref<8x128xf32, #tpu.memory_space<vmem>>, vector<1x128xf32>,
    %c1_i32 = arith.constant 1 : i32
    %11 = arith.addi %0, %c1_i32 : i32
    %12 = arith.index_cast %11 : i32 to index
    %13 = memref.load %arg1[%12] : memref<8xi32, #tpu.memory_space<smem>>
    %14 = arith.index_cast %13 : i32 to index
    %c0_2 = arith.constant 0 : index
    %15 = vector.load %arg2[%14, %c0_2] : memref<64x128xf32, #tpu.memory_space<vmem>>, vector<1x128xf32>
    %16 = arith.index_cast %c1_i32 : i32 to index
    %c0_3 = arith.constant 0 : index
    %17 = vector.load %arg3[%16, %c0_3] : memref<8x128xf32, #tpu.memory_space<vmem>>, vector<1x128xf32>
    %18 = arith.addf %15, %17 : vector<1x128xf32>
    %19 = arith.index_cast %c1_i32 : i32 to index
    %c0_4 = arith.constant 0 : index
    %20 = vector.load %arg4[%19, %c0_4] : memref<8x128xf32, #tpu.memory_space<vmem>>, vector<1x128xf32>
    tpu.vector_store %arg4[%19, %c0_4], %18 {strides = array<i32>} : memref<8x128xf32, #tpu.memory_space<vmem>>, vector<1x128xf32>,
    %c2_i32 = arith.constant 2 : i32
    %21 = arith.addi %0, %c2_i32 : i32
    %22 = arith.index_cast %21 : i32 to index
    %23 = memref.load %arg1[%22] : memref<8xi32, #tpu.memory_space<smem>>
    %24 = arith.index_cast %23 : i32 to index
    %c0_5 = arith.constant 0 : index
    %25 = vector.load %arg2[%24, %c0_5] : memref<64x128xf32, #tpu.memory_space<vmem>>, vector<1x128xf32>
    %26 = arith.index_cast %c2_i32 : i32 to index
    %c0_6 = arith.constant 0 : index
    %27 = vector.load %arg3[%26, %c0_6] : memref<8x128xf32, #tpu.memory_space<vmem>>, vector<1x128xf32>
    %28 = arith.addf %25, %27 : vector<1x128xf32>
    %29 = arith.index_cast %c2_i32 : i32 to index
    %c0_7 = arith.constant 0 : index
    %30 = vector.load %arg4[%29, %c0_7] : memref<8x128xf32, #tpu.memory_space<vmem>>, vector<1x128xf32>
    tpu.vector_store %arg4[%29, %c0_7], %28 {strides = array<i32>} : memref<8x128xf32, #tpu.memory_space<vmem>>, vector<1x128xf32>,
    %c3_i32 = arith.constant 3 : i32
    %31 = arith.addi %0, %c3_i32 : i32
    %32 = arith.index_cast %31 : i32 to index
    %33 = memref.load %arg1[%32] : memref<8xi32, #tpu.memory_space<smem>>
    %34 = arith.index_cast %33 : i32 to index
    %c0_8 = arith.constant 0 : index
    %35 = vector.load %arg2[%34, %c0_8] : memref<64x128xf32, #tpu.memory_space<vmem>>, vector<1x128xf32>
    %36 = arith.index_cast %c3_i32 : i32 to index
    %c0_9 = arith.constant 0 : index
    %37 = vector.load %arg3[%36, %c0_9] : memref<8x128xf32, #tpu.memory_space<vmem>>, vector<1x128xf32>
    %38 = arith.addf %35, %37 : vector<1x128xf32>
    %39 = arith.index_cast %c3_i32 : i32 to index
    %c0_10 = arith.constant 0 : index
    %40 = vector.load %arg4[%39, %c0_10] : memref<8x128xf32, #tpu.memory_space<vmem>>, vector<1x128xf32>
    tpu.vector_store %arg4[%39, %c0_10], %38 {strides = array<i32>} : memref<8x128xf32, #tpu.memory_space<vmem>>, vector<1x128xf32>,
    %c4_i32 = arith.constant 4 : i32
    %41 = arith.addi %0, %c4_i32 : i32
    %42 = arith.index_cast %41 : i32 to index
    %43 = memref.load %arg1[%42] : memref<8xi32, #tpu.memory_space<smem>>
    %44 = arith.index_cast %43 : i32 to index
    %c0_11 = arith.constant 0 : index
    %45 = vector.load %arg2[%44, %c0_11] : memref<64x128xf32, #tpu.memory_space<vmem>>, vector<1x128xf32>
    %46 = arith.index_cast %c4_i32 : i32 to index
    %c0_12 = arith.constant 0 : index
    %47 = vector.load %arg3[%46, %c0_12] : memref<8x128xf32, #tpu.memory_space<vmem>>, vector<1x128xf32>
    %48 = arith.addf %45, %47 : vector<1x128xf32>
    %49 = arith.index_cast %c4_i32 : i32 to index
    %c0_13 = arith.constant 0 : index
    %50 = vector.load %arg4[%49, %c0_13] : memref<8x128xf32, #tpu.memory_space<vmem>>, vector<1x128xf32>
    tpu.vector_store %arg4[%49, %c0_13], %48 {strides = array<i32>} : memref<8x128xf32, #tpu.memory_space<vmem>>, vector<1x128xf32>,
    %c5_i32 = arith.constant 5 : i32
    %51 = arith.addi %0, %c5_i32 : i32
    %52 = arith.index_cast %51 : i32 to index
    %53 = memref.load %arg1[%52] : memref<8xi32, #tpu.memory_space<smem>>
    %54 = arith.index_cast %53 : i32 to index
    %c0_14 = arith.constant 0 : index
    %55 = vector.load %arg2[%54, %c0_14] : memref<64x128xf32, #tpu.memory_space<vmem>>, vector<1x128xf32>
    %56 = arith.index_cast %c5_i32 : i32 to index
    %c0_15 = arith.constant 0 : index
    %57 = vector.load %arg3[%56, %c0_15] : memref<8x128xf32, #tpu.memory_space<vmem>>, vector<1x128xf32>
    %58 = arith.addf %55, %57 : vector<1x128xf32>
    %59 = arith.index_cast %c5_i32 : i32 to index
    %c0_16 = arith.constant 0 : index
    %60 = vector.load %arg4[%59, %c0_16] : memref<8x128xf32, #tpu.memory_space<vmem>>, vector<1x128xf32>
    tpu.vector_store %arg4[%59, %c0_16], %58 {strides = array<i32>} : memref<8x128xf32, #tpu.memory_space<vmem>>, vector<1x128xf32>,
    %c6_i32 = arith.constant 6 : i32
    %61 = arith.addi %0, %c6_i32 : i32
    %62 = arith.index_cast %61 : i32 to index
    %63 = memref.load %arg1[%62] : memref<8xi32, #tpu.memory_space<smem>>
    %64 = arith.index_cast %63 : i32 to index
    %c0_17 = arith.constant 0 : index
    %65 = vector.load %arg2[%64, %c0_17] : memref<64x128xf32, #tpu.memory_space<vmem>>, vector<1x128xf32>
    %66 = arith.index_cast %c6_i32 : i32 to index
    %c0_18 = arith.constant 0 : index
    %67 = vector.load %arg3[%66, %c0_18] : memref<8x128xf32, #tpu.memory_space<vmem>>, vector<1x128xf32>
    %68 = arith.addf %65, %67 : vector<1x128xf32>
    %69 = arith.index_cast %c6_i32 : i32 to index
    %c0_19 = arith.constant 0 : index
    %70 = vector.load %arg4[%69, %c0_19] : memref<8x128xf32, #tpu.memory_space<vmem>>, vector<1x128xf32>
    tpu.vector_store %arg4[%69, %c0_19], %68 {strides = array<i32>} : memref<8x128xf32, #tpu.memory_space<vmem>>, vector<1x128xf32>,
    %c7_i32 = arith.constant 7 : i32
    %71 = arith.addi %0, %c7_i32 : i32
    %72 = arith.index_cast %71 : i32 to index
    %73 = memref.load %arg1[%72] : memref<8xi32, #tpu.memory_space<smem>>
    %74 = arith.index_cast %73 : i32 to index
    %c0_20 = arith.constant 0 : index
    %75 = vector.load %arg2[%74, %c0_20] : memref<64x128xf32, #tpu.memory_space<vmem>>, vector<1x128xf32>
    %76 = arith.index_cast %c7_i32 : i32 to index
    %c0_21 = arith.constant 0 : index
    %77 = vector.load %arg3[%76, %c0_21] : memref<8x128xf32, #tpu.memory_space<vmem>>, vector<1x128xf32>
    %78 = arith.addf %75, %77 : vector<1x128xf32>
    %79 = arith.index_cast %c7_i32 : i32 to index
    %c0_22 = arith.constant 0 : index
    %80 = vector.load %arg4[%79, %c0_22] : memref<8x128xf32, #tpu.memory_space<vmem>>, vector<1x128xf32>
    tpu.vector_store %arg4[%79, %c0_22], %78 {strides = array<i32>} : memref<8x128xf32, #tpu.memory_space<vmem>>, vector<1x128xf32>,
    %c8_i32_23 = arith.constant 8 : i32
    return
  }
  func.func @transform_0(%arg0: i32, %arg1: memref<8xi32, #tpu.memory_space<smem>>) -> (i32, i32) {
    %c0_i32 = arith.constant 0 : i32
    %c0_i32_0 = arith.constant 0 : i32
    %c0_i32_1 = arith.constant 0 : i32
    return %c0_i32, %c0_i32_0 : i32, i32
  }
  func.func @transform_1(%arg0: i32, %arg1: memref<8xi32, #tpu.memory_space<smem>>) -> (i32, i32) {
    %c0_i32 = arith.constant 0 : i32
    %c0_i32_0 = arith.constant 0 : i32
    return %arg0, %c0_i32 : i32, i32
  }
  func.func @transform_2(%arg0: i32, %arg1: memref<8xi32, #tpu.memory_space<smem>>) -> (i32, i32) {
    %c0_i32 = arith.constant 0 : i32
    %c0_i32_0 = arith.constant 0 : i32
    return %arg0, %c0_i32 : i32, i32
  }
}

module attributes {stable_mosaic.version = 11 : i64} {
  func.func @_embed_resident_kernel(%arg0: i32, %arg1: memref<8xi32, #tpu.memory_space<smem>>, %arg2: memref<64x128xf32, #tpu.memory_space<vmem>>, %arg3: memref<8x128xf32, #tpu.memory_space<vmem>>, %arg4: memref<8x128xf32, #tpu.memory_space<vmem>>) attributes {dimension_semantics = [#tpu.dimension_semantics<arbitrary>], iteration_bounds = array<i64: 1>, scalar_prefetch = 1 : i64, scratch_operands = 0 : i64, tpu.core_type = #tpu.core_type<tc>, window_params = [{pipeline_mode = #tpu.pipeline_mode<synchronous>, transform_indices = @transform_0, window_bounds = array<i64: 64, 128>}, {transform_indices = @transform_1, window_bounds = array<i64: 8, 128>}, {transform_indices = @transform_2, window_bounds = array<i64: 8, 128>}]} {
    %c8_i32 = arith.constant 8 : i32
    %0 = arith.muli %arg0, %c8_i32 : i32
    %c0_i32 = arith.constant 0 : i32
    %1 = arith.addi %0, %c0_i32 : i32
    %2 = arith.index_cast %1 : i32 to index
    %3 = memref.load %arg1[%2] : memref<8xi32, #tpu.memory_space<smem>>
    %4 = arith.index_cast %3 : i32 to index
    %c0 = arith.constant 0 : index
    %5 = vector.load %arg2[%4, %c0] : memref<64x128xf32, #tpu.memory_space<vmem>>, vector<1x128xf32>
    %6 = arith.index_cast %c0_i32 : i32 to index
    %c0_0 = arith.constant 0 : index
    %7 = vector.load %arg3[%6, %c0_0] : memref<8x128xf32, #tpu.memory_space<vmem>>, vector<1x128xf32>
    %8 = arith.addf %5, %7 : vector<1x128xf32>
    %9 = arith.index_cast %c0_i32 : i32 to index
    %c0_1 = arith.constant 0 : index
    %10 = vector.load %arg4[%9, %c0_1] : memref<8x128xf32, #tpu.memory_space<vmem>>, vector<1x128xf32>
    tpu.vector_store %arg4[%9, %c0_1], %8 {strides = array<i32>} : memref<8x128xf32, #tpu.memory_space<vmem>>, vector<1x128xf32>,
    %c1_i32 = arith.constant 1 : i32
    %11 = arith.addi %0, %c1_i32 : i32
    %12 = arith.index_cast %11 : i32 to index
    %13 = memref.load %arg1[%12] : memref<8xi32, #tpu.memory_space<smem>>
    %14 = arith.index_cast %13 : i32 to index
    %c0_2 = arith.constant 0 : index
    %15 = vector.load %arg2[%14, %c0_2] : memref<64x128xf32, #tpu.memory_space<vmem>>, vector<1x128xf32>
    %16 = arith.index_cast %c1_i32 : i32 to index
    %c0_3 = arith.constant 0 : index
    %17 = vector.load %arg3[%16, %c0_3] : memref<8x128xf32, #tpu.memory_space<vmem>>, vector<1x128xf32>
    %18 = arith.addf %15, %17 : vector<1x128xf32>
    %19 = arith.index_cast %c1_i32 : i32 to index
    %c0_4 = arith.constant 0 : index
    %20 = vector.load %arg4[%19, %c0_4] : memref<8x128xf32, #tpu.memory_space<vmem>>, vector<1x128xf32>
    tpu.vector_store %arg4[%19, %c0_4], %18 {strides = array<i32>} : memref<8x128xf32, #tpu.memory_space<vmem>>, vector<1x128xf32>,
    %c2_i32 = arith.constant 2 : i32
    %21 = arith.addi %0, %c2_i32 : i32
    %22 = arith.index_cast %21 : i32 to index
    %23 = memref.load %arg1[%22] : memref<8xi32, #tpu.memory_space<smem>>
    %24 = arith.index_cast %23 : i32 to index
    %c0_5 = arith.constant 0 : index
    %25 = vector.load %arg2[%24, %c0_5] : memref<64x128xf32, #tpu.memory_space<vmem>>, vector<1x128xf32>
    %26 = arith.index_cast %c2_i32 : i32 to index
    %c0_6 = arith.constant 0 : index
    %27 = vector.load %arg3[%26, %c0_6] : memref<8x128xf32, #tpu.memory_space<vmem>>, vector<1x128xf32>
    %28 = arith.addf %25, %27 : vector<1x128xf32>
    %29 = arith.index_cast %c2_i32 : i32 to index
    %c0_7 = arith.constant 0 : index
    %30 = vector.load %arg4[%29, %c0_7] : memref<8x128xf32, #tpu.memory_space<vmem>>, vector<1x128xf32>
    tpu.vector_store %arg4[%29, %c0_7], %28 {strides = array<i32>} : memref<8x128xf32, #tpu.memory_space<vmem>>, vector<1x128xf32>,
    %c3_i32 = arith.constant 3 : i32
    %31 = arith.addi %0, %c3_i32 : i32
    %32 = arith.index_cast %31 : i32 to index
    %33 = memref.load %arg1[%32] : memref<8xi32, #tpu.memory_space<smem>>
    %34 = arith.index_cast %33 : i32 to index
    %c0_8 = arith.constant 0 : index
    %35 = vector.load %arg2[%34, %c0_8] : memref<64x128xf32, #tpu.memory_space<vmem>>, vector<1x128xf32>
    %36 = arith.index_cast %c3_i32 : i32 to index
    %c0_9 = arith.constant 0 : index
    %37 = vector.load %arg3[%36, %c0_9] : memref<8x128xf32, #tpu.memory_space<vmem>>, vector<1x128xf32>
    %38 = arith.addf %35, %37 : vector<1x128xf32>
    %39 = arith.index_cast %c3_i32 : i32 to index
    %c0_10 = arith.constant 0 : index
    %40 = vector.load %arg4[%39, %c0_10] : memref<8x128xf32, #tpu.memory_space<vmem>>, vector<1x128xf32>
    tpu.vector_store %arg4[%39, %c0_10], %38 {strides = array<i32>} : memref<8x128xf32, #tpu.memory_space<vmem>>, vector<1x128xf32>,
    %c4_i32 = arith.constant 4 : i32
    %41 = arith.addi %0, %c4_i32 : i32
    %42 = arith.index_cast %41 : i32 to index
    %43 = memref.load %arg1[%42] : memref<8xi32, #tpu.memory_space<smem>>
    %44 = arith.index_cast %43 : i32 to index
    %c0_11 = arith.constant 0 : index
    %45 = vector.load %arg2[%44, %c0_11] : memref<64x128xf32, #tpu.memory_space<vmem>>, vector<1x128xf32>
    %46 = arith.index_cast %c4_i32 : i32 to index
    %c0_12 = arith.constant 0 : index
    %47 = vector.load %arg3[%46, %c0_12] : memref<8x128xf32, #tpu.memory_space<vmem>>, vector<1x128xf32>
    %48 = arith.addf %45, %47 : vector<1x128xf32>
    %49 = arith.index_cast %c4_i32 : i32 to index
    %c0_13 = arith.constant 0 : index
    %50 = vector.load %arg4[%49, %c0_13] : memref<8x128xf32, #tpu.memory_space<vmem>>, vector<1x128xf32>
    tpu.vector_store %arg4[%49, %c0_13], %48 {strides = array<i32>} : memref<8x128xf32, #tpu.memory_space<vmem>>, vector<1x128xf32>,
    %c5_i32 = arith.constant 5 : i32
    %51 = arith.addi %0, %c5_i32 : i32
    %52 = arith.index_cast %51 : i32 to index
    %53 = memref.load %arg1[%52] : memref<8xi32, #tpu.memory_space<smem>>
    %54 = arith.index_cast %53 : i32 to index
    %c0_14 = arith.constant 0 : index
    %55 = vector.load %arg2[%54, %c0_14] : memref<64x128xf32, #tpu.memory_space<vmem>>, vector<1x128xf32>
    %56 = arith.index_cast %c5_i32 : i32 to index
    %c0_15 = arith.constant 0 : index
    %57 = vector.load %arg3[%56, %c0_15] : memref<8x128xf32, #tpu.memory_space<vmem>>, vector<1x128xf32>
    %58 = arith.addf %55, %57 : vector<1x128xf32>
    %59 = arith.index_cast %c5_i32 : i32 to index
    %c0_16 = arith.constant 0 : index
    %60 = vector.load %arg4[%59, %c0_16] : memref<8x128xf32, #tpu.memory_space<vmem>>, vector<1x128xf32>
    tpu.vector_store %arg4[%59, %c0_16], %58 {strides = array<i32>} : memref<8x128xf32, #tpu.memory_space<vmem>>, vector<1x128xf32>,
    %c6_i32 = arith.constant 6 : i32
    %61 = arith.addi %0, %c6_i32 : i32
    %62 = arith.index_cast %61 : i32 to index
    %63 = memref.load %arg1[%62] : memref<8xi32, #tpu.memory_space<smem>>
    %64 = arith.index_cast %63 : i32 to index
    %c0_17 = arith.constant 0 : index
    %65 = vector.load %arg2[%64, %c0_17] : memref<64x128xf32, #tpu.memory_space<vmem>>, vector<1x128xf32>
    %66 = arith.index_cast %c6_i32 : i32 to index
    %c0_18 = arith.constant 0 : index
    %67 = vector.load %arg3[%66, %c0_18] : memref<8x128xf32, #tpu.memory_space<vmem>>, vector<1x128xf32>
    %68 = arith.addf %65, %67 : vector<1x128xf32>
    %69 = arith.index_cast %c6_i32 : i32 to index
    %c0_19 = arith.constant 0 : index
    %70 = vector.load %arg4[%69, %c0_19] : memref<8x128xf32, #tpu.memory_space<vmem>>, vector<1x128xf32>
    tpu.vector_store %arg4[%69, %c0_19], %68 {strides = array<i32>} : memref<8x128xf32, #tpu.memory_space<vmem>>, vector<1x128xf32>,
    %c7_i32 = arith.constant 7 : i32
    %71 = arith.addi %0, %c7_i32 : i32
    %72 = arith.index_cast %71 : i32 to index
    %73 = memref.load %arg1[%72] : memref<8xi32, #tpu.memory_space<smem>>
    %74 = arith.index_cast %73 : i32 to index
    %c0_20 = arith.constant 0 : index
    %75 = vector.load %arg2[%74, %c0_20] : memref<64x128xf32, #tpu.memory_space<vmem>>, vector<1x128xf32>
    %76 = arith.index_cast %c7_i32 : i32 to index
    %c0_21 = arith.constant 0 : index
    %77 = vector.load %arg3[%76, %c0_21] : memref<8x128xf32, #tpu.memory_space<vmem>>, vector<1x128xf32>
    %78 = arith.addf %75, %77 : vector<1x128xf32>
    %79 = arith.index_cast %c7_i32 : i32 to index
    %c0_22 = arith.constant 0 : index
    %80 = vector.load %arg4[%79, %c0_22] : memref<8x128xf32, #tpu.memory_space<vmem>>, vector<1x128xf32>
    tpu.vector_store %arg4[%79, %c0_22], %78 {strides = array<i32>} : memref<8x128xf32, #tpu.memory_space<vmem>>, vector<1x128xf32>,
    %c8_i32_23 = arith.constant 8 : i32
    return
  }
  func.func @transform_0(%arg0: i32, %arg1: memref<8xi32, #tpu.memory_space<smem>>) -> (i32, i32) {
    %c0_i32 = arith.constant 0 : i32
    %c0_i32_0 = arith.constant 0 : i32
    %c0_i32_1 = arith.constant 0 : i32
    return %c0_i32, %c0_i32_0 : i32, i32
  }
  func.func @transform_1(%arg0: i32, %arg1: memref<8xi32, #tpu.memory_space<smem>>) -> (i32, i32) {
    %c0_i32 = arith.constant 0 : i32
    %c0_i32_0 = arith.constant 0 : i32
    return %arg0, %c0_i32 : i32, i32
  }
  func.func @transform_2(%arg0: i32, %arg1: memref<8xi32, #tpu.memory_space<smem>>) -> (i32, i32) {
    %c0_i32 = arith.constant 0 : i32
    %c0_i32_0 = arith.constant 0 : i32
    return %arg0, %c0_i32 : i32, i32
  }
}

</mosaic_0001>

<bundles_post_ra>
// kernel: tpu_custom_call.1
= control target key start
LH: loop header
LB: loop body
LE: loop exit
PB: predicated region body
PF: predicated region fallthrough
CT: control target
= control target key end

     0   :  { %s303_s0 = inlined_call_operand.hbm [shape: s32[8], index: 0, kind: input, shape index: {}]   ;;  %s304_s1 = inlined_call_operand.hbm [shape: f32[64,128], index: 1, kind: input, shape index: {}]   ;;  %s305_s2 = inlined_call_operand.hbm [shape: f32[8,128], index: 2, kind: input, shape index: {}]   ;;  %s306_s3 = inlined_call_operand.hbm [shape: f32[8,128], index: 3, kind: output, shape index: {}]  }
   0x1   :  { %s136_s14 = scalar_lea.hbm %s303_s0, 16 }
   0x2   :  { %p137_p0 = scmp.ne.s32.totalorder %s303_s0, %s136_s14  ;;  %p140_p1 = scmp.lt.u32.totalorder %s136_s14, %s303_s0 }
   0x4   :  { %p142_p2 = pnand %p140_p1, %p137_p0 }
   0x6   :  { %145 = shalt.err (!%p142_p2)  }
   0x7   :  { %s220_s19 = smov [#allocation3]  }
   0x8   :  { %9 = dma.hbm_to_smem %s303_s0, 16, %s220_s19, [#allocation2] }
   0x9   :  { %212 = dma.done.wait [#allocation2], 16 }
   0xa   :  { %213 = vsyncadd [#allocation2], 4294967280 }
   0xb   :  { %11 = sfence }
   0xc   :  { %12 = vsyncpa [#allocation5], 0 }
   0xd   :  { %13 = vsyncpa [#allocation8], 0 }
   0xe   :  { %14 = vsyncpa [#allocation6], 0  ;;  %s221_s22 = smov [#allocation4]   ;;  %s146_s26 = scalar_lea.hbm %s304_s1, 1024 }
   0xf   :  { %s20_s23 = sshll.u32 %s221_s22, 4  ;;  %p147_p3 = scmp.ne.s32.totalorder %s304_s1, %s146_s26  ;;  %s21_s23 = int_to_ptr.vmem [resolvable:$true] %s20_s23 }
  0x10   :  { %p150_p4 = scmp.lt.u32.totalorder %s146_s26, %s304_s1 }
  0x12   :  { %p152_p5 = pnand %p150_p4, %p147_p3 }
  0x14   :  { %155 = shalt.err (!%p152_p5)
}
  0x15   :  { %s156_s0 = scalar_lea.vmem %s21_s23, 1024  ;;  %p161_p7 = scmp.lt.s32.totalorder %s21_s23, %s21_s23 }
  0x16   :  { %p157_p6 = scmp.ne.s32.totalorder %s21_s23, %s156_s0  ;;  %p162_p8 = scmp.lt.s32.totalorder %s156_s0, %s156_s0 }
  0x18   :  { %p163_p9 = por %p162_p8, %p161_p7 }
  0x1a   :  { %p164_p10 = pnand %p163_p9, %p157_p6 }
  0x1c   :  { %167 = shalt.err (!%p164_p10)
}
  0x1d   :  { %s222_s4 = smov 128   ;;  %s223_s5 = smov 8  }
  0x1e   :  { %26 = dma.hbm_to_vmem [thread:$0]  %s304_s1, 1024, %s21_s23, [#allocation5], %s222_s4, %s222_s4, %s223_s5  }
  0x1f   :  { %s224_s8 = smov [#allocation7]   ;;  %s168_s12 = scalar_lea.hbm %s305_s2, 128 }
  0x20   :  { %s33_s9 = sshll.u32 %s224_s8, 4  ;;  %p169_p11 = scmp.ne.s32.totalorder %s305_s2, %s168_s12  ;;  %s34_s9 = int_to_ptr.vmem [resolvable:$true] %s33_s9 }
  0x21   :  { %p172_p12 = scmp.lt.u32.totalorder %s168_s12, %s305_s2 }
  0x23   :  { %p174_p13 = pnand %p172_p12, %p169_p11 }
  0x25   :  { %177 = shalt.err (!%p174_p13)
}
  0x26   :  { %s178_s17 = scalar_lea.vmem %s34_s9, 128  ;;  %p183_p1 = scmp.lt.s32.totalorder %s34_s9, %s34_s9 }
  0x27   :  { %p179_p0 = scmp.ne.s32.totalorder %s34_s9, %s178_s17  ;;  %p184_p2 = scmp.lt.s32.totalorder %s178_s17, %s178_s17 }
  0x29   :  { %p185_p3 = por %p184_p2, %p183_p1 }
  0x2b   :  { %p186_p4 = pnand %p185_p3, %p179_p0 }
  0x2d   :  { %189 = shalt.err (!%p186_p4)
}
  0x2e   :  { %36 = dma.hbm_to_vmem [thread:$0]  %s305_s2, 128, %s34_s9, [#allocation8]  }
  0x2f   :  { %214 = dma.done.wait [#allocation5], 1024  }
  0x30   :  { %215 = vsyncadd [#allocation5], 4294966272 }
  0x31   :  { %216 = dma.done.wait [#allocation8], 128  }
  0x32   :  { %217 = vsyncadd [#allocation8], 4294967168  ;;  %s44_s19 = sld [smem:[#allocation3]]  ;;  %s123_s20 = sld [smem:[#allocation3 + $0x1]]  ;;  %v47_v0 = vld [vmem:[#allocation7] sm:$0x1] }
  0x33   :  { %s124_s21 = sld [smem:[#allocation3 + $0x2]]  ;;  %s125_s22 = sld [smem:[#allocation3 + $0x3]]  ;;  %v54_v1 = vld [vmem:[#allocation7 + $0x1] sm:$0x1]  ;;  %v61_v7 = vld [vmem:[#allocation7 + $0x2] sm:$0x1] }
  0x34   :  { %s126_s23 = sld [smem:[#allocation3 + $0x4]]  ;;  %s127_s24 = sld [smem:[#allocation3 + $0x5]]  ;;  %v68_v10 = vld [vmem:[#allocation7 + $0x3] sm:$0x1]  ;;  %v75_v11 = vld [vmem:[#allocation7 + $0x4] sm:$0x1] }
  0x35   :  { %s282_s25 = sld [smem:[#allocation3 + $0x6]]  ;;  %s284_s26 = sld [smem:[#allocation3 + $0x7]]  ;;  %v82_v15 = vld [vmem:[#allocation7 + $0x5] sm:$0x1]  ;;  %v89_v18 = vld [vmem:[#allocation7 + $0x6] sm:$0x1] }
  0x36   :  { %s225_s27 = smov [#allocation9]   ;;  %v96_v19 = vld [vmem:[#allocation7 + $0x7] sm:$0x1] }
  0x37   :  { %s286_s28 = sshll.u32 %s225_s27, 4  ;;  %s106_s28 = int_to_ptr.vmem [resolvable:$true] %s286_s28 }
  0x38   :  { %s45_s2 = scalar_lea.vmem [#allocation4], %s44_s19  ;;  %s52_s29 = scalar_lea.vmem [#allocation4], %s123_s20 }
  0x39   :  { %v46_v2 = vld [vmem:[%s45_s2] sm:$0x1]  ;;  %s59_s30 = scalar_lea.vmem [#allocation4], %s124_s21  ;;  %s66_s0 = scalar_lea.vmem [#allocation4], %s125_s22 }
  0x3a   :  { %v53_v3 = vld [vmem:[%s52_s29] sm:$0x1]  ;;  %v48_v4 = vadd.f32 %v47_v0, %v46_v2  ;;  %s73_s4 = scalar_lea.vmem [#allocation4], %s126_s23  ;;  %s80_s5 = scalar_lea.vmem [#allocation4], %s127_s24 }
  0x3b   :  { %v55_v5 = vadd.f32 %v54_v1, %v53_v3  ;;  %v60_v6 = vld [vmem:[%s59_s30] sm:$0x1]  ;;  %s87_s6 = scalar_lea.vmem [#allocation4], %s282_s25  ;;  %s94_s7 = scalar_lea.vmem [#allocation4], %s284_s26 }
  0x3c   :  { %v67_v8 = vld [vmem:[%s66_s0] sm:$0x1]  ;;  %v62_v9 = vadd.f32 %v61_v7, %v60_v6  ;;  %49 = vst [vmem:[#allocation9] sm:$0x1] %v48_v4  ;;  %s190_s8 = scalar_lea.vmem %s106_s28, 128  ;;  %p195_p6 = scmp.lt.s32.totalorder %s106_s28, %s106_s28 }
  0x3d   :  { %56 = vst [vmem:[#allocation9 + $0x1] sm:$0x1] %v55_v5  ;;  %v69_v12 = vadd.f32 %v68_v10, %v67_v8  ;;  %v74_v13 = vld [vmem:[%s73_s4] sm:$0x1]  ;;  %p191_p5 = scmp.ne.s32.totalorder %s106_s28, %s190_s8  ;;  %p196_p7 = scmp.lt.s32.totalorder %s190_s8, %s190_s8 }
  0x3e   :  { %v81_v14 = vld [vmem:[%s80_s5] sm:$0x1]  ;;  %63 = vst [vmem:[#allocation9 + $0x2] sm:$0x1] %v62_v9  ;;  %v76_v16 = vadd.f32 %v75_v11, %v74_v13 }
  0x3f   :  { %v83_v17 = vadd.f32 %v82_v15, %v81_v14  ;;  %70 = vst [vmem:[#allocation9 + $0x3] sm:$0x1] %v69_v12  ;;  %v88_v20 = vld [vmem:[%s87_s6] sm:$0x1]  ;;  %p197_p8 = por %p196_p7, %p195_p6 }
  0x40   :  { %v95_v21 = vld [vmem:[%s94_s7] sm:$0x1]  ;;  %77 = vst [vmem:[#allocation9 + $0x4] sm:$0x1] %v76_v16  ;;  %v90_v22 = vadd.f32 %v89_v18, %v88_v20 }
  0x41   :  { %84 = vst [vmem:[#allocation9 + $0x5] sm:$0x1] %v83_v17  ;;  %v97_v23 = vadd.f32 %v96_v19, %v95_v21  ;;  %p198_p9 = pnand %p197_p8, %p191_p5 }
  0x42   :  { %91 = vst [vmem:[#allocation9 + $0x6] sm:$0x1] %v90_v22 }
  0x43   :  { %98 = vst [vmem:[#allocation9 + $0x7] sm:$0x1] %v97_v23 }
  0x44   :  { %201 = shalt.err (!%p198_p9)
}
  0x45   :  { %s202_s11 = scalar_lea.hbm %s306_s3, 128 }
  0x46   :  { %p203_p10 = scmp.ne.s32.totalorder %s306_s3, %s202_s11  ;;  %p206_p11 = scmp.lt.u32.totalorder %s202_s11, %s306_s3 }
  0x48   :  { %p208_p12 = pnand %p206_p11, %p203_p10 }
  0x4a   :  { %211 = shalt.err (!%p208_p12)
}
  0x4b   :  { %108 = dma.vmem_to_hbm [thread:$0]  %s106_s28, 128, %s306_s3, [#allocation6]  }
  0x4c   :  { %218 = dma.done.wait [#allocation6], 128  }
  0x4d   :  { %219 = vsyncadd [#allocation6], 4294967168 }
  0x4e   :  { %112 = vsyncpa [#allocation5], 1 }
  0x4f   :  { %113 = vsyncpa [#allocation8], 1 }
  0x50   :  { %114 = vsyncpa [#allocation6], 1 }

// kernel: tpu_custom_call.1
= control target key start
LH: loop header
LB: loop body
LE: loop exit
PB: predicated region body
PF: predicated region fallthrough
CT: control target
= control target key end

     0   :  { %s303_s0 = inlined_call_operand.hbm [shape: s32[8], index: 0, kind: input, shape index: {}]   ;;  %s304_s1 = inlined_call_operand.hbm [shape: f32[64,128], index: 1, kind: input, shape index: {}]   ;;  %s305_s2 = inlined_call_operand.hbm [shape: f32[8,128], index: 2, kind: input, shape index: {}]   ;;  %s306_s3 = inlined_call_operand.hbm [shape: f32[8,128], index: 3, kind: output, shape index: {}]  }
   0x1   :  { %s136_s14 = scalar_lea.hbm %s303_s0, 16 }
   0x2   :  { %p137_p0 = scmp.ne.s32.totalorder %s303_s0, %s136_s14  ;;  %p140_p1 = scmp.lt.u32.totalorder %s136_s14, %s303_s0 }
   0x4   :  { %p142_p2 = pnand %p140_p1, %p137_p0 }
   0x6   :  { %145 = shalt.err (!%p142_p2)  }
   0x7   :  { %s220_s19 = smov [#allocation3]  }
   0x8   :  { %9 = dma.hbm_to_smem %s303_s0, 16, %s220_s19, [#allocation2] }
   0x9   :  { %212 = dma.done.wait [#allocation2], 16 }
   0xa   :  { %213 = vsyncadd [#allocation2], 4294967280 }
   0xb   :  { %11 = sfence }
   0xc   :  { %12 = vsyncpa [#allocation5], 0 }
   0xd   :  { %13 = vsyncpa [#allocation8], 0 }
   0xe   :  { %14 = vsyncpa [#allocation6], 0  ;;  %s221_s22 = smov [#allocation4]   ;;  %s146_s26 = scalar_lea.hbm %s304_s1, 1024 }
   0xf   :  { %s20_s23 = sshll.u32 %s221_s22, 4  ;;  %p147_p3 = scmp.ne.s32.totalorder %s304_s1, %s146_s26  ;;  %s21_s23 = int_to_ptr.vmem [resolvable:$true] %s20_s23 }
  0x10   :  { %p150_p4 = scmp.lt.u32.totalorder %s146_s26, %s304_s1 }
  0x12   :  { %p152_p5 = pnand %p150_p4, %p147_p3 }
  0x14   :  { %155 = shalt.err (!%p152_p5)
}
  0x15   :  { %s156_s0 = scalar_lea.vmem %s21_s23, 1024  ;;  %p161_p7 = scmp.lt.s32.totalorder %s21_s23, %s21_s23 }
  0x16   :  { %p157_p6 = scmp.ne.s32.totalorder %s21_s23, %s156_s0  ;;  %p162_p8 = scmp.lt.s32.totalorder %s156_s0, %s156_s0 }
  0x18   :  { %p163_p9 = por %p162_p8, %p161_p7 }
  0x1a   :  { %p164_p10 = pnand %p163_p9, %p157_p6 }
  0x1c   :  { %167 = shalt.err (!%p164_p10)
}
  0x1d   :  { %s222_s4 = smov 128   ;;  %s223_s5 = smov 8  }
  0x1e   :  { %26 = dma.hbm_to_vmem [thread:$0]  %s304_s1, 1024, %s21_s23, [#allocation5], %s222_s4, %s222_s4, %s223_s5  }
  0x1f   :  { %s224_s8 = smov [#allocation7]   ;;  %s168_s12 = scalar_lea.hbm %s305_s2, 128 }
  0x20   :  { %s33_s9 = sshll.u32 %s224_s8, 4  ;;  %p169_p11 = scmp.ne.s32.totalorder %s305_s2, %s168_s12  ;;  %s34_s9 = int_to_ptr.vmem [resolvable:$true] %s33_s9 }
  0x21   :  { %p172_p12 = scmp.lt.u32.totalorder %s168_s12, %s305_s2 }
  0x23   :  { %p174_p13 = pnand %p172_p12, %p169_p11 }
  0x25   :  { %177 = shalt.err (!%p174_p13)
}
  0x26   :  { %s178_s17 = scalar_lea.vmem %s34_s9, 128  ;;  %p183_p1 = scmp.lt.s32.totalorder %s34_s9, %s34_s9 }
  0x27   :  { %p179_p0 = scmp.ne.s32.totalorder %s34_s9, %s178_s17  ;;  %p184_p2 = scmp.lt.s32.totalorder %s178_s17, %s178_s17 }
  0x29   :  { %p185_p3 = por %p184_p2, %p183_p1 }
  0x2b   :  { %p186_p4 = pnand %p185_p3, %p179_p0 }
  0x2d   :  { %189 = shalt.err (!%p186_p4)
}
  0x2e   :  { %36 = dma.hbm_to_vmem [thread:$0]  %s305_s2, 128, %s34_s9, [#allocation8]  }
  0x2f   :  { %214 = dma.done.wait [#allocation5], 1024  }
  0x30   :  { %215 = vsyncadd [#allocation5], 4294966272 }
  0x31   :  { %216 = dma.done.wait [#allocation8], 128  }
  0x32   :  { %217 = vsyncadd [#allocation8], 4294967168  ;;  %s44_s19 = sld [smem:[#allocation3]]  ;;  %s123_s20 = sld [smem:[#allocation3 + $0x1]]  ;;  %v47_v0 = vld [vmem:[#allocation7] sm:$0x1] }
  0x33   :  { %s124_s21 = sld [smem:[#allocation3 + $0x2]]  ;;  %s125_s22 = sld [smem:[#allocation3 + $0x3]]  ;;  %v54_v1 = vld [vmem:[#allocation7 + $0x1] sm:$0x1]  ;;  %v61_v7 = vld [vmem:[#allocation7 + $0x2] sm:$0x1] }
  0x34   :  { %s126_s23 = sld [smem:[#allocation3 + $0x4]]  ;;  %s127_s24 = sld [smem:[#allocation3 + $0x5]]  ;;  %v68_v10 = vld [vmem:[#allocation7 + $0x3] sm:$0x1]  ;;  %v75_v11 = vld [vmem:[#allocation7 + $0x4] sm:$0x1] }
  0x35   :  { %s282_s25 = sld [smem:[#allocation3 + $0x6]]  ;;  %s284_s26 = sld [smem:[#allocation3 + $0x7]]  ;;  %v82_v15 = vld [vmem:[#allocation7 + $0x5] sm:$0x1]  ;;  %v89_v18 = vld [vmem:[#allocation7 + $0x6] sm:$0x1] }
  0x36   :  { %s225_s27 = smov [#allocation9]   ;;  %v96_v19 = vld [vmem:[#allocation7 + $0x7] sm:$0x1] }
  0x37   :  { %s286_s28 = sshll.u32 %s225_s27, 4  ;;  %s106_s28 = int_to_ptr.vmem [resolvable:$true] %s286_s28 }
  0x38   :  { %s45_s2 = scalar_lea.vmem [#allocation4], %s44_s19  ;;  %s52_s29 = scalar_lea.vmem [#allocation4], %s123_s20 }
  0x39   :  { %v46_v2 = vld [vmem:[%s45_s2] sm:$0x1]  ;;  %s59_s30 = scalar_lea.vmem [#allocation4], %s124_s21  ;;  %s66_s0 = scalar_lea.vmem [#allocation4], %s125_s22 }
  0x3a   :  { %v53_v3 = vld [vmem:[%s52_s29] sm:$0x1]  ;;  %v48_v4 = vadd.f32 %v47_v0, %v46_v2  ;;  %s73_s4 = scalar_lea.vmem [#allocation4], %s126_s23  ;;  %s80_s5 = scalar_lea.vmem [#allocation4], %s127_s24 }
  0x3b   :  { %v55_v5 = vadd.f32 %v54_v1, %v53_v3  ;;  %v60_v6 = vld [vmem:[%s59_s30] sm:$0x1]  ;;  %s87_s6 = scalar_lea.vmem [#allocation4], %s282_s25  ;;  %s94_s7 = scalar_lea.vmem [#allocation4], %s284_s26 }
  0x3c   :  { %v67_v8 = vld [vmem:[%s66_s0] sm:$0x1]  ;;  %v62_v9 = vadd.f32 %v61_v7, %v60_v6  ;;  %49 = vst [vmem:[#allocation9] sm:$0x1] %v48_v4  ;;  %s190_s8 = scalar_lea.vmem %s106_s28, 128  ;;  %p195_p6 = scmp.lt.s32.totalorder %s106_s28, %s106_s28 }
  0x3d   :  { %56 = vst [vmem:[#allocation9 + $0x1] sm:$0x1] %v55_v5  ;;  %v69_v12 = vadd.f32 %v68_v10, %v67_v8  ;;  %v74_v13 = vld [vmem:[%s73_s4] sm:$0x1]  ;;  %p191_p5 = scmp.ne.s32.totalorder %s106_s28, %s190_s8  ;;  %p196_p7 = scmp.lt.s32.totalorder %s190_s8, %s190_s8 }
  0x3e   :  { %v81_v14 = vld [vmem:[%s80_s5] sm:$0x1]  ;;  %63 = vst [vmem:[#allocation9 + $0x2] sm:$0x1] %v62_v9  ;;  %v76_v16 = vadd.f32 %v75_v11, %v74_v13 }
  0x3f   :  { %v83_v17 = vadd.f32 %v82_v15, %v81_v14  ;;  %70 = vst [vmem:[#allocation9 + $0x3] sm:$0x1] %v69_v12  ;;  %v88_v20 = vld [vmem:[%s87_s6] sm:$0x1]  ;;  %p197_p8 = por %p196_p7, %p195_p6 }
  0x40   :  { %v95_v21 = vld [vmem:[%s94_s7] sm:$0x1]  ;;  %77 = vst [vmem:[#allocation9 + $0x4] sm:$0x1] %v76_v16  ;;  %v90_v22 = vadd.f32 %v89_v18, %v88_v20 }
  0x41   :  { %84 = vst [vmem:[#allocation9 + $0x5] sm:$0x1] %v83_v17  ;;  %v97_v23 = vadd.f32 %v96_v19, %v95_v21  ;;  %p198_p9 = pnand %p197_p8, %p191_p5 }
  0x42   :  { %91 = vst [vmem:[#allocation9 + $0x6] sm:$0x1] %v90_v22 }
  0x43   :  { %98 = vst [vmem:[#allocation9 + $0x7] sm:$0x1] %v97_v23 }
  0x44   :  { %201 = shalt.err (!%p198_p9)
}
  0x45   :  { %s202_s11 = scalar_lea.hbm %s306_s3, 128 }
  0x46   :  { %p203_p10 = scmp.ne.s32.totalorder %s306_s3, %s202_s11  ;;  %p206_p11 = scmp.lt.u32.totalorder %s202_s11, %s306_s3 }
  0x48   :  { %p208_p12 = pnand %p206_p11, %p203_p10 }
  0x4a   :  { %211 = shalt.err (!%p208_p12)
}
  0x4b   :  { %108 = dma.vmem_to_hbm [thread:$0]  %s106_s28, 128, %s306_s3, [#allocation6]  }
  0x4c   :  { %218 = dma.done.wait [#allocation6], 128  }
  0x4d   :  { %219 = vsyncadd [#allocation6], 4294967168 }
  0x4e   :  { %112 = vsyncpa [#allocation5], 1 }
  0x4f   :  { %113 = vsyncpa [#allocation8], 1 }
  0x50   :  { %114 = vsyncpa [#allocation6], 1 }

</bundles_post_ra>
